<compile_context>
chip_gen: v5e
topology: v5e:2x2
jax: 0.10.0
libtpu: 0.0.40
codegen_flags: <defaults>
</compile_context>

<pallas_src>
import math

import jax
import jax.numpy as jnp
from jax.experimental import pallas as pl
from jax.experimental.pallas import tpu as pltpu


def _round_up(a, b):
    return (a + b - 1) // b * b


def projection_head_kernel(xf_ref, w1_ref, b1_ref, w2c_ref, b2c_ref,
                           gamma_ref, beta_ref, mgrp_ref, o_ref):
    # Folded layout: lane index = (row-within-group) * feature_dim + feature.
    xf = xf_ref[...]                               # (tbg, fold*D_in)
    w1 = w1_ref[...]                               # (fold*D_in, fold*H) block-diag
    b1 = b1_ref[...].astype(jnp.float32)           # (1, fold*H)
    w2c = w2c_ref[...]                             # (fold*H, fold*D_out), mean-centered
    b2c = b2c_ref[...].astype(jnp.float32)         # (1, fold*D_out), mean-centered
    gamma = gamma_ref[...].astype(jnp.float32)     # (1, fold*D_out)
    beta = beta_ref[...].astype(jnp.float32)       # (1, fold*D_out)
    mgrp = mgrp_ref[...]                           # (fold*D_out, fold*D_out) f32 block-avg

    # Linear 1 (MXU, f32 accumulate) + exact erf-GELU (matches torch.nn.GELU()).
    h = jnp.dot(xf.astype(w1.dtype), w1, preferred_element_type=jnp.float32) + b1
    h = 0.5 * h * (1.0 + jax.lax.erf(h * 0.7071067811865475))

    # Linear 2 with the LayerNorm mean subtraction folded into the weights:
    #   yc = (h @ w2 + b2) - group_mean(...)  ==  h @ (w2bd @ (I - Mgrp)) + b2t @ (I - Mgrp)
    yc = jnp.dot(h.astype(w2c.dtype), w2c, preferred_element_type=jnp.float32) + b2c

    # Per-original-row (= contiguous group of D_out lanes) variance via one
    # block-averaging matmul -> no cross-lane reshape/reduce, stays 128-lane dense.
    var = jnp.dot(yc * yc, mgrp, preferred_element_type=jnp.float32)
    out = yc * jax.lax.rsqrt(var + 1e-5) * gamma + beta

    o_ref[...] = out.astype(o_ref.dtype)


def make_projection_head(w1, b1, w2, b2, gamma, beta, *,
                         tbg_max=1024, matmul_dtype=None):
    """Precompute folded / block-diagonal parameters once; return a jitted apply(x)."""
    D_in, H = w1.shape
    D_out = w2.shape[1]

    # Fold consecutive rows into lanes so the output (and all intermediates) are
    # 128-lane dense.  fold == 1 degenerates to the plain layout.
    if D_out < 128 and 128 % D_out == 0:
        fold = 128 // D_out
    else:
        fold = 1
    fD_in, fH, fD_out = fold * D_in, fold * H, fold * D_out

    mm_dtype_1 = matmul_dtype if matmul_dtype is not None else w1.dtype
    mm_dtype_2 = matmul_dtype if matmul_dtype is not None else w2.dtype

    eye_f = jnp.eye(fold, dtype=jnp.float32)
    mgrp = jnp.kron(eye_f, jnp.full((D_out, D_out), 1.0 / D_out, jnp.float32))
    center = jnp.eye(fD_out, dtype=jnp.float32) - mgrp          # (I - Mgrp)

    # Block-diagonal / lane-tiled parameters (computed once, VMEM-resident per call).
    w1bd = jnp.kron(eye_f, w1.astype(jnp.float32)).astype(mm_dtype_1)
    w2c = (jnp.kron(eye_f, w2.astype(jnp.float32)) @ center).astype(mm_dtype_2)
    b1t = jnp.tile(b1.reshape(1, H).astype(jnp.float32), (1, fold))
    b2c = jnp.tile(b2.reshape(1, D_out).astype(jnp.float32), (1, fold)) @ center
    gammat = jnp.tile(gamma.reshape(1, D_out).astype(jnp.float32), (1, fold))
    betat = jnp.tile(beta.reshape(1, D_out).astype(jnp.float32), (1, fold))

    const = lambda a: pl.BlockSpec(a.shape, lambda *_: (0,) * a.ndim)

    @jax.jit
    def apply(x):
        B = x.shape[0]
        out_dtype = x.dtype

        # Tight tiling: minimal number of steps, minimal padding (sublane-aligned),
        # and >=2 steps when the batch is big enough so v7x's two TCs both get work.
        G = -(-B // fold)                       # folded rows needed
        num_steps = -(-G // tbg_max)
        if G >= 16 and num_steps < 2:
            num_steps = 2
        tbg = _round_up(-(-G // num_steps), 8)  # group rows per grid step
        g_pad = num_steps * tbg
        b_pad = g_pad * fold

        if matmul_dtype is not None:
            x = x.astype(matmul_dtype)          # halve x HBM bytes + fast MXU (opt-in)
        if b_pad != B:
            x = jnp.pad(x, ((0, b_pad - B), (0, 0)))   # small: < tbg*fold extra rows
        xf = x.reshape(g_pad, fD_in)            # fold rows into lanes: free reshape

        in_isz = jnp.dtype(x.dtype).itemsize
        cost = pl.CostEstimate(
            flops=int(2 * g_pad * (fD_in * fH + fH * fD_out + fD_out * fD_out)),
            transcendentals=int(g_pad * fH),
            bytes_accessed=int(g_pad * fD_in * in_isz
                               + g_pad * fD_out * jnp.dtype(out_dtype).itemsize
                               + w1bd.size * w1bd.dtype.itemsize
                               + w2c.size * w2c.dtype.itemsize
                               + mgrp.size * 4),
        )

        out_f = pl.pallas_call(
            projection_head_kernel,
            out_shape=jax.ShapeDtypeStruct((g_pad, fD_out), out_dtype),
            grid=(num_steps,),
            in_specs=[pl.BlockSpec((tbg, fD_in), lambda i: (i, 0)),
                      const(w1bd), const(b1t), const(w2c), const(b2c),
                      const(gammat), const(betat), const(mgrp)],
            out_specs=pl.BlockSpec((tbg, fD_out), lambda i: (i, 0)),
            compiler_params=pltpu.CompilerParams(
                dimension_semantics=("parallel",)),
            cost_estimate=cost,
        )(xf, w1bd, b1t, w2c, b2c, gammat, betat, mgrp)

        # Unfold: (g_pad, fold*D_out) -> (b_pad, D_out) is again a free reshape.
        return out_f.reshape(b_pad, D_out)[:B]

    return apply


def _reference(x, w1, b1, w2, b2, gamma, beta):
    h = x @ w1 + b1
    h = jax.nn.gelu(h, approximate=False)
    y = h @ w2 + b2
    mean = jnp.mean(y, axis=-1, keepdims=True)
    var = jnp.mean((y - mean) ** 2, axis=-1, keepdims=True)
    return (y - mean) / jnp.sqrt(var + 1e-5) * gamma + beta


if __name__ == "__main__":
    # ProjectionHead(input_dim=32, output_dim=16); hidden_dim defaults to input_dim.
    D_in, D_out = 32, 16
    H = D_in

    key = jax.random.PRNGKey(0)
    kx, k1, k2, k3, k4, kx2 = jax.random.split(key, 6)

    # PyTorch-like uniform init bounds for the Linear layers.
    lim1 = 1.0 / math.sqrt(D_in)
    lim2 = 1.0 / math.sqrt(H)
    w1 = jax.random.uniform(k1, (D_in, H), jnp.float32, -lim1, lim1)
    b1 = jax.random.uniform(k2, (H,), jnp.float32, -lim1, lim1)
    w2 = jax.random.uniform(k3, (H, D_out), jnp.float32, -lim2, lim2)
    b2 = jax.random.uniform(k4, (D_out,), jnp.float32, -lim2, lim2)
    gamma = jnp.ones((D_out,), jnp.float32)   # LayerNorm weight
    beta = jnp.zeros((D_out,), jnp.float32)   # LayerNorm bias

    # Folded parameters built once (hoisted out of the per-call path).
    head = make_projection_head(w1, b1, w2, b2, gamma, beta)

    # Test 1: tiny batch (single grid step, folded output exactly one 128-lane row).
    B1 = 8
    x1 = jax.random.normal(kx, (B1, D_in), dtype=jnp.float32)
    out1 = jax.block_until_ready(head(x1))
    ref1 = _reference(x1, w1, b1, w2, b2, gamma, beta)
    assert out1.shape == (B1, D_out)
    assert jnp.allclose(out1, ref1, atol=1e-4, rtol=1e-4)

    # Test 2: batch exercising tight padding (2100 -> 2176 rows, not 4096) and a
    # 2-step "parallel" grid (both v7x TensorCores active).
    B2 = 2100
    x2 = jax.random.normal(kx2, (B2, D_in), dtype=jnp.float32)
    out2 = jax.block_until_ready(head(x2))
    ref2 = _reference(x2, w1, b1, w2, b2, gamma, beta)
    assert out2.shape == (B2, D_out)
    assert jnp.allclose(out2, ref2, atol=1e-4, rtol=1e-4)

    print("KERNEL_OK")
</pallas_src>

<mosaic_0001>
module attributes {stable_mosaic.version = 11 : i64} {
  func.func @projection_head_kernel(%arg0: i32, %arg1: memref<8x256xf32, #tpu.memory_space<vmem>>, %arg2: memref<256x256xf32, #tpu.memory_space<vmem>>, %arg3: memref<1x256xf32, #tpu.memory_space<vmem>>, %arg4: memref<256x128xf32, #tpu.memory_space<vmem>>, %arg5: memref<1x128xf32, #tpu.memory_space<vmem>>, %arg6: memref<1x128xf32, #tpu.memory_space<vmem>>, %arg7: memref<1x128xf32, #tpu.memory_space<vmem>>, %arg8: memref<128x128xf32, #tpu.memory_space<vmem>>, %arg9: memref<8x128xf32, #tpu.memory_space<vmem>>) attributes {dimension_semantics = [#tpu.dimension_semantics<parallel>], iteration_bounds = array<i64: 1>, scalar_prefetch = 0 : i64, scratch_operands = 0 : i64, tpu.core_type = #tpu.core_type<tc>, window_params = [{transform_indices = @transform_0, window_bounds = array<i64: 8, 256>}, {pipeline_mode = #tpu.pipeline_mode<synchronous>, transform_indices = @transform_1, window_bounds = array<i64: 256, 256>}, {pipeline_mode = #tpu.pipeline_mode<synchronous>, transform_indices = @transform_2, window_bounds = array<i64: 1, 256>}, {pipeline_mode = #tpu.pipeline_mode<synchronous>, transform_indices = @transform_3, window_bounds = array<i64: 256, 128>}, {pipeline_mode = #tpu.pipeline_mode<synchronous>, transform_indices = @transform_4, window_bounds = array<i64: 1, 128>}, {pipeline_mode = #tpu.pipeline_mode<synchronous>, transform_indices = @transform_5, window_bounds = array<i64: 1, 128>}, {pipeline_mode = #tpu.pipeline_mode<synchronous>, transform_indices = @transform_6, window_bounds = array<i64: 1, 128>}, {pipeline_mode = #tpu.pipeline_mode<synchronous>, transform_indices = @transform_7, window_bounds = array<i64: 128, 128>}, {transform_indices = @transform_8, window_bounds = array<i64: 8, 128>}]} {
    %c0 = arith.constant 0 : index
    %c0_0 = arith.constant 0 : index
    %0 = vector.load %arg1[%c0, %c0_0] : memref<8x256xf32, #tpu.memory_space<vmem>>, vector<8x256xf32>
    %c0_1 = arith.constant 0 : index
    %c0_2 = arith.constant 0 : index
    %1 = vector.load %arg2[%c0_1, %c0_2] : memref<256x256xf32, #tpu.memory_space<vmem>>, vector<256x256xf32>
    %c0_3 = arith.constant 0 : index
    %c0_4 = arith.constant 0 : index
    %2 = vector.load %arg3[%c0_3, %c0_4] : memref<1x256xf32, #tpu.memory_space<vmem>>, vector<1x256xf32>
    %c0_5 = arith.constant 0 : index
    %c0_6 = arith.constant 0 : index
    %3 = vector.load %arg4[%c0_5, %c0_6] : memref<256x128xf32, #tpu.memory_space<vmem>>, vector<256x128xf32>
    %c0_7 = arith.constant 0 : index
    %c0_8 = arith.constant 0 : index
    %4 = vector.load %arg5[%c0_7, %c0_8] : memref<1x128xf32, #tpu.memory_space<vmem>>, vector<1x128xf32>
    %c0_9 = arith.constant 0 : index
    %c0_10 = arith.constant 0 : index
    %5 = vector.load %arg6[%c0_9, %c0_10] : memref<1x128xf32, #tpu.memory_space<vmem>>, vector<1x128xf32>
    %c0_11 = arith.constant 0 : index
    %c0_12 = arith.constant 0 : index
    %6 = vector.load %arg7[%c0_11, %c0_12] : memref<1x128xf32, #tpu.memory_space<vmem>>, vector<1x128xf32>
    %c0_13 = arith.constant 0 : index
    %c0_14 = arith.constant 0 : index
    %7 = vector.load %arg8[%c0_13, %c0_14] : memref<128x128xf32, #tpu.memory_space<vmem>>, vector<128x128xf32>
    %cst = arith.constant dense<0.000000e+00> : vector<8x256xf32>
    %8 = tpu.matmul %0, %1, %cst {dimension_numbers = #tpu.dot_dimension_numbers<[1], [0], [0], [1], [0, 0, 1, 1], [], []>} : vector<8x256xf32>, vector<256x256xf32>, vector<8x256xf32> -> vector<8x256xf32>
    %9 = vector.broadcast %2 : vector<1x256xf32> to vector<8x256xf32>
    %10 = arith.addf %8, %9 : vector<8x256xf32>
    %cst_15 = arith.constant 5.000000e-01 : f32
    %11 = vector.broadcast %cst_15 : f32 to vector<8x256xf32>
    %12 = arith.mulf %11, %10 : vector<8x256xf32>
    %cst_16 = arith.constant 0.707106769 : f32
    %13 = vector.broadcast %cst_16 : f32 to vector<8x256xf32>
    %14 = arith.mulf %10, %13 : vector<8x256xf32>
    %15 = math.erf %14 : vector<8x256xf32>
    %cst_17 = arith.constant 1.000000e+00 : f32
    %16 = vector.broadcast %cst_17 : f32 to vector<8x256xf32>
    %17 = arith.addf %16, %15 : vector<8x256xf32>
    %18 = arith.mulf %12, %17 : vector<8x256xf32>
    %cst_18 = arith.constant dense<0.000000e+00> : vector<8x128xf32>
    %19 = tpu.matmul %18, %3, %cst_18 {dimension_numbers = #tpu.dot_dimension_numbers<[1], [0], [0], [1], [0, 0, 1, 1], [], []>} : vector<8x256xf32>, vector<256x128xf32>, vector<8x128xf32> -> vector<8x128xf32>
    %20 = vector.broadcast %4 : vector<1x128xf32> to vector<8x128xf32>
    %21 = arith.addf %19, %20 : vector<8x128xf32>
    %22 = arith.mulf %21, %21 : vector<8x128xf32>
    %cst_19 = arith.constant dense<0.000000e+00> : vector<8x128xf32>
    %23 = tpu.matmul %22, %7, %cst_19 {dimension_numbers = #tpu.dot_dimension_numbers<[1], [0], [0], [1], [0, 0, 1, 1], [], []>} : vector<8x128xf32>, vector<128x128xf32>, vector<8x128xf32> -> vector<8x128xf32>
    %cst_20 = arith.constant 9.99999974E-6 : f32
    %24 = vector.broadcast %cst_20 : f32 to vector<8x128xf32>
    %25 = arith.addf %23, %24 : vector<8x128xf32>
    %26 = math.rsqrt %25 : vector<8x128xf32>
    %27 = arith.mulf %21, %26 : vector<8x128xf32>
    %28 = vector.broadcast %5 : vector<1x128xf32> to vector<8x128xf32>
    %29 = arith.mulf %27, %28 : vector<8x128xf32>
    %30 = vector.broadcast %6 : vector<1x128xf32> to vector<8x128xf32>
    %31 = arith.addf %29, %30 : vector<8x128xf32>
    %c0_21 = arith.constant 0 : index
    %c0_22 = arith.constant 0 : index
    %32 = vector.load %arg9[%c0_21, %c0_22] : memref<8x128xf32, #tpu.memory_space<vmem>>, vector<8x128xf32>
    tpu.vector_store %arg9[%c0_21, %c0_22], %31 {strides = array<i32>} : memref<8x128xf32, #tpu.memory_space<vmem>>, vector<8x128xf32>,
    return
  }
  func.func @transform_0(%arg0: i32) -> (i32, i32) {
    %c0_i32 = arith.constant 0 : i32
    %c0_i32_0 = arith.constant 0 : i32
    return %arg0, %c0_i32 : i32, i32
  }
  func.func @transform_1(%arg0: i32) -> (i32, i32) {
    %c0_i32 = arith.constant 0 : i32
    %c0_i32_0 = arith.constant 0 : i32
    %c0_i32_1 = arith.constant 0 : i32
    return %c0_i32, %c0_i32_0 : i32, i32
  }
  func.func @transform_2(%arg0: i32) -> (i32, i32) {
    %c0_i32 = arith.constant 0 : i32
    %c0_i32_0 = arith.constant 0 : i32
    %c0_i32_1 = arith.constant 0 : i32
    return %c0_i32, %c0_i32_0 : i32, i32
  }
  func.func @transform_3(%arg0: i32) -> (i32, i32) {
    %c0_i32 = arith.constant 0 : i32
    %c0_i32_0 = arith.constant 0 : i32
    %c0_i32_1 = arith.constant 0 : i32
    return %c0_i32, %c0_i32_0 : i32, i32
  }
  func.func @transform_4(%arg0: i32) -> (i32, i32) {
    %c0_i32 = arith.constant 0 : i32
    %c0_i32_0 = arith.constant 0 : i32
    %c0_i32_1 = arith.constant 0 : i32
    return %c0_i32, %c0_i32_0 : i32, i32
  }
  func.func @transform_5(%arg0: i32) -> (i32, i32) {
    %c0_i32 = arith.constant 0 : i32
    %c0_i32_0 = arith.constant 0 : i32
    %c0_i32_1 = arith.constant 0 : i32
    return %c0_i32, %c0_i32_0 : i32, i32
  }
  func.func @transform_6(%arg0: i32) -> (i32, i32) {
    %c0_i32 = arith.constant 0 : i32
    %c0_i32_0 = arith.constant 0 : i32
    %c0_i32_1 = arith.constant 0 : i32
    return %c0_i32, %c0_i32_0 : i32, i32
  }
  func.func @transform_7(%arg0: i32) -> (i32, i32) {
    %c0_i32 = arith.constant 0 : i32
    %c0_i32_0 = arith.constant 0 : i32
    %c0_i32_1 = arith.constant 0 : i32
    return %c0_i32, %c0_i32_0 : i32, i32
  }
  func.func @transform_8(%arg0: i32) -> (i32, i32) {
    %c0_i32 = arith.constant 0 : i32
    %c0_i32_0 = arith.constant 0 : i32
    return %arg0, %c0_i32 : i32, i32
  }
}

</mosaic_0001>

<bundles_post_ra>
// kernel: apply.1
= control target key start
LH: loop header
LB: loop body
LE: loop exit
PB: predicated region body
PF: predicated region fallthrough
CT: control target
= control target key end

     0   :  { %13 = vsyncpa [#allocation3], 0  ;;  %s679_s0 = inlined_call_operand.vmem [shape: f32[8,256], index: 0, kind: input, shape index: {}]   ;;  %s680_s1 = inlined_call_operand.hbm [shape: f32[256,256], index: 1, kind: input, shape index: {}]   ;;  %s681_s2 = inlined_call_operand.vmem [shape: f32[1,256], index: 2, kind: input, shape index: {}]   ;;  %s682_s3 = inlined_call_operand.hbm [shape: f32[256,128], index: 3, kind: input, shape index: {}]   ;;  %s683_s4 = inlined_call_operand.vmem [shape: f32[1,128], index: 4, kind: input, shape index: {}]   ;;  %s684_s5 = inlined_call_operand.vmem [shape: f32[1,128], index: 5, kind: input, shape index: {}]   ;;  %s685_s6 = inlined_call_operand.vmem [shape: f32[1,128], index: 6, kind: input, shape index: {}]   ;;  %s686_s7 = inlined_call_operand.vmem [shape: f32[128,128], index: 7, kind: input, shape index: {}]   ;;  %s687_s8 = inlined_call_operand.vmem [shape: f32[8,128], index: 8, kind: output, shape index: {}]  }
   0x1   :  { %s21_s29 = sshll.u32 %s680_s1, 4  ;;  %s22_s29 = int_to_ptr.hbm [resolvable:$true] %s21_s29 }
   0x2   :  { %14 = vsyncpa [#allocation5], 0  ;;  %s511_s30 = smov [#allocation2]   ;;  %s36_s12 = sshll.u32 %s682_s3, 4  ;;  %s37_s12 = int_to_ptr.hbm [resolvable:$true] %s36_s12 }
   0x3   :  { %s23_s9 = sshll.u32 %s511_s30, 4  ;;  %s512_s13 = smov 256   ;;  %s24_s9 = int_to_ptr.vmem [resolvable:$true] %s23_s9 }
   0x4   :  { %s513_s14 = smov 16   ;;  %s514_s15 = smov [#allocation4]  }
   0x5   :  { %29 = dma.hbm_to_vmem [thread:$0]  %s22_s29, 8192, %s24_s9, [#allocation3], %s512_s13, %s512_s13, %s513_s14  }
   0x6   :  { %s38_s16 = sshll.u32 %s514_s15, 4  ;;  %s515_s17 = smov 128   ;;  %s39_s16 = int_to_ptr.vmem [resolvable:$true] %s38_s16 }
   0x7   :  { %s516_s18 = smov 8  }
   0x8   :  { %44 = dma.hbm_to_vmem [thread:$0]  %s37_s12, 4096, %s39_s16, [#allocation5], %s515_s17, %s515_s17, %s516_s18  }
   0x9   :  { %507 = dma.done.wait [#allocation3], 8192  }
   0xa   :  { %508 = vsyncadd [#allocation3], 4294959104 }
   0xb   :  { %509 = dma.done.wait [#allocation5], 4096  }
   0xc   :  { %510 = vsyncadd [#allocation5], 4294963200  ;;  %v93_v0 = vld [vmem:[#allocation2 + $0xf0] sm:$0xff]  ;;  %v94_v1 = vld [vmem:[#allocation2 + $0xf8] sm:$0xff] }
   0xd   :  { %v91_v2 = vld [vmem:[#allocation2 + $0xe0] sm:$0xff]  ;;  %184 = vmatpush.msra.mxu0 %v93_v0  ;;  %224 = vmatpush.msra.mxu2 %v94_v1  ;;  %v125_v3 = vld [vmem:[#allocation2 + $0x1f0] sm:$0xff]  ;;  %v92_v4 = vld [vmem:[#allocation2 + $0xe8] sm:$0xff] }
   0xe   :  { %v126_v5 = vld [vmem:[#allocation2 + $0x1f8] sm:$0xff]  ;;  %204 = vmatpush.msra.mxu1 %v125_v3  ;;  %v89_v6 = vld [vmem:[#allocation2 + $0xd0] sm:$0xff]  ;;  %v123_v7 = vld [vmem:[#allocation2 + $0x1e0] sm:$0xff] }
   0xf   :  { %244 = vmatpush.msra.mxu3 %v126_v5  ;;  %v90_v8 = vld [vmem:[#allocation2 + $0xd8] sm:$0xff]  ;;  %185 = vmatpush.msra.mxu0 %v91_v2  ;;  %v124_v9 = vld [vmem:[#allocation2 + $0x1e8] sm:$0xff]  ;;  %v121_v10 = vld [vmem:[#allocation2 + $0x1d0] sm:$0xff] }
  0x10   :  { %225 = vmatpush.msra.mxu2 %v92_v4  ;;  %205 = vmatpush.msra.mxu1 %v123_v7  ;;  %v87_v11 = vld [vmem:[#allocation2 + $0xc0] sm:$0xff]  ;;  %v88_v12 = vld [vmem:[#allocation2 + $0xc8] sm:$0xff]  ;;  %v122_v13 = vld [vmem:[#allocation2 + $0x1d8] sm:$0xff] }
  0x11   :  { %245 = vmatpush.msra.mxu3 %v124_v9  ;;  %186 = vmatpush.msra.mxu0 %v89_v6  ;;  %v119_v14 = vld [vmem:[#allocation2 + $0x1c0] sm:$0xff]  ;;  %v120_v15 = vld [vmem:[#allocation2 + $0x1c8] sm:$0xff]  ;;  %v85_v16 = vld [vmem:[#allocation2 + $0xb0] sm:$0xff] }
  0x12   :  { %226 = vmatpush.msra.mxu2 %v90_v8  ;;  %206 = vmatpush.msra.mxu1 %v121_v10  ;;  %v86_v17 = vld [vmem:[#allocation2 + $0xb8] sm:$0xff]  ;;  %v117_v18 = vld [vmem:[#allocation2 + $0x1b0] sm:$0xff]  ;;  %v83_v20 = vld [vmem:[#allocation2 + $0xa0] sm:$0xff] }
  0x13   :  { %246 = vmatpush.msra.mxu3 %v122_v13  ;;  %187 = vmatpush.msra.mxu0 %v87_v11  ;;  %v118_v19 = vld [vmem:[#allocation2 + $0x1b8] sm:$0xff]  ;;  %v84_v21 = vld [vmem:[#allocation2 + $0xa8] sm:$0xff]  ;;  %v115_v22 = vld [vmem:[#allocation2 + $0x1a0] sm:$0xff] }
  0x14   :  { %227 = vmatpush.msra.mxu2 %v88_v12  ;;  %207 = vmatpush.msra.mxu1 %v119_v14  ;;  %v116_v23 = vld [vmem:[#allocation2 + $0x1a8] sm:$0xff]  ;;  %v81_v24 = vld [vmem:[#allocation2 + $0x90] sm:$0xff]  ;;  %v82_v25 = vld [vmem:[#allocation2 + $0x98] sm:$0xff] }
  0x15   :  { %247 = vmatpush.msra.mxu3 %v120_v15  ;;  %188 = vmatpush.msra.mxu0 %v85_v16  ;;  %v113_v26 = vld [vmem:[#allocation2 + $0x190] sm:$0xff]  ;;  %v114_v27 = vld [vmem:[#allocation2 + $0x198] sm:$0xff]  ;;  %v79_v28 = vld [vmem:[#allocation2 + $0x80] sm:$0xff] }
  0x16   :  { %228 = vmatpush.msra.mxu2 %v86_v17  ;;  %208 = vmatpush.msra.mxu1 %v117_v18  ;;  %v80_v29 = vld [vmem:[#allocation2 + $0x88] sm:$0xff]  ;;  %v111_v30 = vld [vmem:[#allocation2 + $0x180] sm:$0xff]  ;;  %v77_v32 = vld [vmem:[#allocation2 + $0x70] sm:$0xff] }
  0x17   :  { %248 = vmatpush.msra.mxu3 %v118_v19  ;;  %189 = vmatpush.msra.mxu0 %v83_v20  ;;  %v112_v31 = vld [vmem:[#allocation2 + $0x188] sm:$0xff]  ;;  %v78_v33 = vld [vmem:[#allocation2 + $0x78] sm:$0xff]  ;;  %v109_v34 = vld [vmem:[#allocation2 + $0x170] sm:$0xff] }
  0x18   :  { %229 = vmatpush.msra.mxu2 %v84_v21  ;;  %209 = vmatpush.msra.mxu1 %v115_v22  ;;  %v110_v35 = vld [vmem:[#allocation2 + $0x178] sm:$0xff]  ;;  %v75_v36 = vld [vmem:[#allocation2 + $0x60] sm:$0xff]  ;;  %v76_v37 = vld [vmem:[#allocation2 + $0x68] sm:$0xff] }
  0x19   :  { %249 = vmatpush.msra.mxu3 %v116_v23  ;;  %190 = vmatpush.msra.mxu0 %v81_v24  ;;  %v107_v38 = vld [vmem:[#allocation2 + $0x160] sm:$0xff]  ;;  %v108_v39 = vld [vmem:[#allocation2 + $0x168] sm:$0xff]  ;;  %v73_v40 = vld [vmem:[#allocation2 + $0x50] sm:$0xff] }
  0x1a   :  { %230 = vmatpush.msra.mxu2 %v82_v25  ;;  %210 = vmatpush.msra.mxu1 %v113_v26  ;;  %v74_v41 = vld [vmem:[#allocation2 + $0x58] sm:$0xff]  ;;  %v105_v42 = vld [vmem:[#allocation2 + $0x150] sm:$0xff]  ;;  %v71_v44 = vld [vmem:[#allocation2 + $0x40] sm:$0xff] }
  0x1b   :  { %250 = vmatpush.msra.mxu3 %v114_v27  ;;  %191 = vmatpush.msra.mxu0 %v79_v28  ;;  %v106_v43 = vld [vmem:[#allocation2 + $0x158] sm:$0xff]  ;;  %v72_v45 = vld [vmem:[#allocation2 + $0x48] sm:$0xff]  ;;  %v69_v46 = vld [vmem:[#allocation2 + $0x30] sm:$0xff] }
  0x1c   :  { %231 = vmatpush.msra.mxu2 %v80_v29  ;;  %211 = vmatpush.msra.mxu1 %v111_v30  ;;  %v103_v47 = vld [vmem:[#allocation2 + $0x140] sm:$0xff]  ;;  %v104_v48 = vld [vmem:[#allocation2 + $0x148] sm:$0xff]  ;;  %v70_v49 = vld [vmem:[#allocation2 + $0x38] sm:$0xff] }
  0x1d   :  { %251 = vmatpush.msra.mxu3 %v112_v31  ;;  %192 = vmatpush.msra.mxu0 %v77_v32  ;;  %v101_v50 = vld [vmem:[#allocation2 + $0x130] sm:$0xff]  ;;  %v102_v51 = vld [vmem:[#allocation2 + $0x138] sm:$0xff]  ;;  %v67_v52 = vld [vmem:[#allocation2 + $0x20] sm:$0xff] }
  0x1e   :  { %232 = vmatpush.msra.mxu2 %v78_v33  ;;  %212 = vmatpush.msra.mxu1 %v109_v34  ;;  %v68_v53 = vld [vmem:[#allocation2 + $0x28] sm:$0xff]  ;;  %v99_v54 = vld [vmem:[#allocation2 + $0x120] sm:$0xff]  ;;  %v65_v56 = vld [vmem:[#allocation2 + $0x10] sm:$0xff] }
  0x1f   :  { %252 = vmatpush.msra.mxu3 %v110_v35  ;;  %193 = vmatpush.msra.mxu0 %v75_v36  ;;  %v100_v55 = vld [vmem:[#allocation2 + $0x128] sm:$0xff]  ;;  %v66_v57 = vld [vmem:[#allocation2 + $0x18] sm:$0xff]  ;;  %v97_v58 = vld [vmem:[#allocation2 + $0x110] sm:$0xff] }
  0x20   :  { %233 = vmatpush.msra.mxu2 %v76_v37  ;;  %213 = vmatpush.msra.mxu1 %v107_v38  ;;  %v98_v59 = vld [vmem:[#allocation2 + $0x118] sm:$0xff]  ;;  %v63_v60 = vld [vmem:[#allocation2] sm:$0xff]  ;;  %v64_v61 = vld [vmem:[#allocation2 + $0x8] sm:$0xff] }
  0x21   :  { %253 = vmatpush.msra.mxu3 %v108_v39  ;;  %194 = vmatpush.msra.mxu0 %v73_v40  ;;  %v61_v62 = vld [vmem:[%s679_s0] sm:$0xff]  ;;  %v96_v0 = vld [vmem:[#allocation2 + $0x108] sm:$0xff]  ;;  %v143_v3 = vld [vmem:[#allocation4 + $0x78] sm:$0xff] }
  0x22   :  { %234 = vmatpush.msra.mxu2 %v74_v41  ;;  %214 = vmatpush.msra.mxu1 %v105_v42  ;;  %v95_v63 = vld [vmem:[#allocation2 + $0x100] sm:$0xff]  ;;  %v62_v1 = vld [vmem:[%s679_s0 + $0x8] sm:$0xff]  ;;  %v142_v4 = vld [vmem:[#allocation4 + $0x70] sm:$0xff] }
  0x23   :  { %254 = vmatpush.msra.mxu3 %v106_v43  ;;  %195 = vmatpush.msra.mxu0 %v71_v44  ;;  %v127_v2 = vld [vmem:[%s681_s2] sm:$0x3]  ;;  %v141_v6 = vld [vmem:[#allocation4 + $0x68] sm:$0xff]  ;;  %v159_v9 = vld [vmem:[#allocation4 + $0xf8] sm:$0xff] }
  0x24   :  { %235 = vmatpush.msra.mxu2 %v72_v45  ;;  %215 = vmatpush.msra.mxu1 %v103_v47  ;;  %v180_v5 = vperm.slane %v127_v2, 0  ;;  %v140_v8 = vld [vmem:[#allocation4 + $0x60] sm:$0xff]  ;;  %v139_v12 = vld [vmem:[#allocation4 + $0x58] sm:$0xff]  ;;  %v158_v13 = vld [vmem:[#allocation4 + $0xf0] sm:$0xff]  ;;  %v181_v15 = vperm.slane %v127_v2, 1 }
  0x25   :  { %255 = vmatpush.msra.mxu3 %v104_v48  ;;  %196 = vmatpush.msra.mxu0 %v69_v46  ;;  %v138_v16 = vld [vmem:[#allocation4 + $0x50] sm:$0xff]  ;;  %v157_v17 = vld [vmem:[#allocation4 + $0xe8] sm:$0xff]  ;;  %v156_v21 = vld [vmem:[#allocation4 + $0xe0] sm:$0xff] }
  0x26   :  { %236 = vmatpush.msra.mxu2 %v70_v49  ;;  %216 = vmatpush.msra.mxu1 %v101_v50  ;;  %v137_v20 = vld [vmem:[#allocation4 + $0x48] sm:$0xff]  ;;  %v136_v25 = vld [vmem:[#allocation4 + $0x40] sm:$0xff]  ;;  %v155_v26 = vld [vmem:[#allocation4 + $0xd8] sm:$0xff] }
  0x27   :  { %256 = vmatpush.msra.mxu3 %v102_v51  ;;  %197 = vmatpush.msra.mxu0 %v67_v52  ;;  %v135_v29 = vld [vmem:[#allocation4 + $0x38] sm:$0xff]  ;;  %v154_v30 = vld [vmem:[#allocation4 + $0xd0] sm:$0xff]  ;;  %v153_v35 = vld [vmem:[#allocation4 + $0xc8] sm:$0xff] }
  0x28   :  { %237 = vmatpush.msra.mxu2 %v68_v53  ;;  %217 = vmatpush.msra.mxu1 %v99_v54  ;;  %v134_v34 = vld [vmem:[#allocation4 + $0x30] sm:$0xff]  ;;  %v133_v39 = vld [vmem:[#allocation4 + $0x28] sm:$0xff]  ;;  %v152_v40 = vld [vmem:[#allocation4 + $0xc0] sm:$0xff] }
  0x29   :  { %257 = vmatpush.msra.mxu3 %v100_v55  ;;  %198 = vmatpush.msra.mxu0 %v65_v56  ;;  %v132_v44 = vld [vmem:[#allocation4 + $0x20] sm:$0xff]  ;;  %v151_v45 = vld [vmem:[#allocation4 + $0xb8] sm:$0xff]  ;;  %v150_v51 = vld [vmem:[#allocation4 + $0xb0] sm:$0xff] }
  0x2a   :  { %238 = vmatpush.msra.mxu2 %v66_v57  ;;  %218 = vmatpush.msra.mxu1 %v97_v58  ;;  %v131_v50 = vld [vmem:[#allocation4 + $0x18] sm:$0xff]  ;;  %v130_v55 = vld [vmem:[#allocation4 + $0x10] sm:$0xff]  ;;  %v149_v56 = vld [vmem:[#allocation4 + $0xa8] sm:$0xff] }
  0x2b   :  { %258 = vmatpush.msra.mxu3 %v98_v59  ;;  %199 = vmatpush.msra.mxu0 %v63_v60 }
  0x2c   :  { %239 = vmatpush.msra.mxu2 %v64_v61  ;;  %200 = vmatmul.f32.vlgmr.msra.gmra.mxu0 %v61_v62  ;;  %v129_v61 = vld [vmem:[#allocation4 + $0x8] sm:$0xff] }
  0x2d   :  { %240 = vmatmul.f32.vlgmr.msra.gmra.mxu2 %v61_v62  ;;  %219 = vmatpush.msra.mxu1 %v95_v63  ;;  %v148_v62 = vld [vmem:[#allocation4 + $0xa0] sm:$0xff] }
  0x2e   :  { %259 = vmatpush.msra.mxu3 %v96_v0  ;;  %220 = vmatmul.f32.vlgmr.msra.gmra.mxu1 %v62_v1  ;;  %v128_v0 = vld [vmem:[#allocation4] sm:$0xff] }
  0x2f   :  { %260 = vmatmul.f32.vlgmr.msra.gmra.mxu3 %v62_v1  ;;  %355 = vmatpush.msrb.mxu0 %v143_v3  ;;  %v147_v1 = vld [vmem:[#allocation4 + $0x98] sm:$0xff]  ;;  %v146_v3 = vld [vmem:[#allocation4 + $0x90] sm:$0xff] }
  0x30   :  { %375 = vmatpush.msrb.mxu1 %v159_v9 }
  0x31   :  { %356 = vmatpush.msrb.mxu0 %v142_v4 }
  0x32   :  { %376 = vmatpush.msrb.mxu1 %v158_v13 }
  0x33   :  { %357 = vmatpush.msrb.mxu0 %v141_v6 }
  0x34   :  { %377 = vmatpush.msrb.mxu1 %v157_v17  ;;  %v178_v17 = vld [vmem:[%s686_s7 + $0x78] sm:$0xff] }
  0x35   :  { %358 = vmatpush.msrb.mxu0 %v140_v8  ;;  %v145_v8 = vld [vmem:[#allocation4 + $0x88] sm:$0xff]  ;;  %396 = vmatpush.msrb.mxu2 %v178_v17 }
  0x36   :  { %378 = vmatpush.msrb.mxu1 %v156_v21 }
  0x37   :  { %359 = vmatpush.msrb.mxu0 %v139_v12 }
  0x38   :  { %379 = vmatpush.msrb.mxu1 %v155_v26 }
  0x39   :  { %360 = vmatpush.msrb.mxu0 %v138_v16 }
  0x3a   :  { %380 = vmatpush.msrb.mxu1 %v154_v30 }
  0x3b   :  { %361 = vmatpush.msrb.mxu0 %v137_v20 }
  0x3c   :  { %381 = vmatpush.msrb.mxu1 %v153_v35  ;;  %v173_v35 = vld [vmem:[%s686_s7 + $0x50] sm:$0xff] }
  0x3d   :  { %362 = vmatpush.msrb.mxu0 %v136_v25  ;;  %v175_v25 = vld [vmem:[%s686_s7 + $0x60] sm:$0xff] }
  0x3e   :  { %382 = vmatpush.msrb.mxu1 %v152_v40 }
  0x3f   :  { %363 = vmatpush.msrb.mxu0 %v135_v29 }
  0x40   :  { %383 = vmatpush.msrb.mxu1 %v151_v45 }
  0x41   :  { %364 = vmatpush.msrb.mxu0 %v134_v34 }
  0x42   :  { %384 = vmatpush.msrb.mxu1 %v150_v51 }
  0x43   :  { %365 = vmatpush.msrb.mxu0 %v133_v39  ;;  %v172_v39 = vld [vmem:[%s686_s7 + $0x48] sm:$0xff] }
  0x44   :  { %385 = vmatpush.msrb.mxu1 %v149_v56 }
  0x45   :  { %366 = vmatpush.msrb.mxu0 %v132_v44 }
  0x46   :  { %386 = vmatpush.msrb.mxu1 %v148_v62 }
  0x47   :  { %367 = vmatpush.msrb.mxu0 %v131_v50 }
  0x48   :  { %387 = vmatpush.msrb.mxu1 %v147_v1 }
  0x49   :  { %368 = vmatpush.msrb.mxu0 %v130_v55 }
  0x4a   :  { %388 = vmatpush.msrb.mxu1 %v146_v3 }
  0x4b   :  { %369 = vmatpush.msrb.mxu0 %v129_v61 }
  0x4c   :  { %389 = vmatpush.msrb.mxu1 %v145_v8  ;;  %v166_v8 = vld [vmem:[%s686_s7 + $0x18] sm:$0xff] }
  0x4d   :  { %370 = vmatpush.msrb.mxu0 %v128_v0 }
  0xa9   :  { %v201_v7 = vpop.f32.mrf.mxu0 }
  0xaa   :  { %v202_v10 = vadd.f32 %v201_v7, %v180_v5 }
  0xab   :  { %v221_v11 = vpop.f32.mrf.mxu1 }
  0xac   :  { %v577_v14 = vadd.f32 %v221_v11, %v202_v10  ;;  %v144_v11 = vld [vmem:[#allocation4 + $0x80] sm:$0xff] }
  0xad   :  { %390 = vmatpush.msrb.mxu1 %v144_v11  ;;  %v450_v11 = vld [vmem:[%s683_s4] ss:$0 sm:$0xff] }
  0xae   :  { %v580_v18 = vmul.f32 0.70710677, %v577_v14 }
  0xb0   :  { %v241_v19 = vpop.f32.mrf.mxu2  ;;  %v268_v22 = vmul.f32 %v580_v18, %v580_v18 }
  0xb1   :  { %v242_v23 = vadd.f32 %v241_v19, %v181_v15  ;;  %v177_v19 = vld [vmem:[%s686_s7 + $0x70] sm:$0xff] }
  0xb2   :  { %v261_v24 = vpop.f32.mrf.mxu3  ;;  %v584_v27 = vmin.f32 %v268_v22, 16.0  ;;  %v176_v22 = vld [vmem:[%s686_s7 + $0x68] sm:$0xff]  ;;  %397 = vmatpush.msrb.mxu2 %v177_v19 }
  0xb3   :  { %v586_v28 = vadd.f32 %v261_v24, %v242_v23 }
  0xb4   :  { %v270_v31 = vmul.f32 2.1237322e-06, %v584_v27  ;;  %v281_v32 = vmul.f32 3.8918573e-05, %v584_v27  ;;  %398 = vmatpush.msrb.mxu2 %v176_v22 }
  0xb5   :  { %v591_v33 = vmul.f32 0.70710677, %v586_v28 }
  0xb6   :  { %v271_v36 = vadd.f32 0.00028619796, %v270_v31  ;;  %v282_v37 = vadd.f32 0.001143296, %v281_v32  ;;  %v174_v31 = vld [vmem:[%s686_s7 + $0x58] sm:$0xff]  ;;  %399 = vmatpush.msrb.mxu2 %v175_v25 }
  0xb7   :  { %v308_v38 = vmul.f32 %v591_v33, %v591_v33 }
  0xb8   :  { %v272_v41 = vmul.f32 %v271_v36, %v584_v27  ;;  %v283_v42 = vmul.f32 %v282_v37, %v584_v27  ;;  %400 = vmatpush.msrb.mxu2 %v174_v31 }
  0xb9   :  { %v597_v43 = vmin.f32 %v308_v38, 16.0 }
  0xba   :  { %v273_v46 = vadd.f32 0.0036580483, %v272_v41  ;;  %v284_v47 = vadd.f32 0.014752088, %v283_v42  ;;  %401 = vmatpush.msrb.mxu2 %v173_v35 }
  0xbb   :  { %v310_v48 = vmul.f32 2.1237322e-06, %v597_v43  ;;  %v321_v49 = vmul.f32 3.8918573e-05, %v597_v43 }
  0xbc   :  { %v285_v52 = vmul.f32 %v284_v47, %v584_v27  ;;  %v274_v58 = vmul.f32 %v273_v46, %v584_v27  ;;  %402 = vmatpush.msrb.mxu2 %v172_v39 }
  0xbd   :  { %v311_v53 = vadd.f32 0.00028619796, %v310_v48  ;;  %v322_v54 = vadd.f32 0.001143296, %v321_v49  ;;  %v170_v49 = vld [vmem:[%s686_s7 + $0x38] sm:$0xff] }
  0xbe   :  { %v286_v57 = vadd.f32 0.112945676, %v285_v52  ;;  %v275_v6 = vadd.f32 0.05243302, %v274_v58 }
  0xbf   :  { %v312_v59 = vmul.f32 %v311_v53, %v597_v43  ;;  %v323_v60 = vmul.f32 %v322_v54, %v597_v43  ;;  %v169_v54 = vld [vmem:[%s686_s7 + $0x30] sm:$0xff] }
  0xc0   :  { %v287_v63 = vmul.f32 %v286_v57, %v584_v27  ;;  %v276_v15 = vmul.f32 %v275_v6, %v584_v27 }
  0xc1   :  { %v324_v2 = vadd.f32 0.014752088, %v323_v60  ;;  %v313_v5 = vadd.f32 0.0036580483, %v312_v59 }
  0xc2   :  { %v288_v4 = vadd.f32 0.4994258, %v287_v63  ;;  %v277_v23 = vadd.f32 0.18741608, %v276_v15 }
  0xc3   :  { %v325_v7 = vmul.f32 %v324_v2, %v597_v43  ;;  %v314_v13 = vmul.f32 %v313_v5, %v597_v43  ;;  %v265_v5 = vmul.f32 0.5, %v586_v28  ;;  %v165_v28 = vld [vmem:[%s686_s7 + $0x10] sm:$0xff] }
  0xc4   :  { %v289_v9 = vmul.f32 %v288_v4, %v584_v27  ;;  %v278_v32 = vmul.f32 %v277_v23, %v584_v27  ;;  %v171_v27 = vld [vmem:[%s686_s7 + $0x40] sm:$0xff] }
  0xc5   :  { %v326_v10 = vadd.f32 0.112945676, %v325_v7  ;;  %v315_v21 = vadd.f32 0.05243302, %v314_v13  ;;  %403 = vmatpush.msrb.mxu2 %v171_v27 }
  0xc6   :  { %v290_v12 = vadd.f32 1.0, %v289_v9  ;;  %v279_v40 = vadd.f32 1.1283791, %v278_v32  ;;  %v164_v9 = vld [vmem:[%s686_s7 + $0x8] sm:$0xff]  ;;  %v452_v32 = vld [vmem:[%s685_s6] ss:$0 sm:$0xff] }
  0xc7   :  { %v327_v16 = vmul.f32 %v326_v10, %v597_v43  ;;  %v316_v30 = vmul.f32 %v315_v21, %v597_v43  ;;  %404 = vmatpush.msrb.mxu2 %v170_v49  ;;  %v163_v10 = vld [vmem:[%s686_s7] sm:$0xff] }
  0xc8   :  { %453 = vrcp.f32 %v290_v12  ;;  %v302_v37 = vand.u32 2147483648, %v290_v12  ;;  %v300_v42 = vand.u32 2147483647, %v290_v12  ;;  %vm296_vm1 = vweird.f32 %v290_v12 }
  0xc9   :  { %v328_v20 = vadd.f32 0.4994258, %v327_v16  ;;  %v317_v38 = vadd.f32 0.18741608, %v316_v30  ;;  %v280_v50 = vmul.f32 %v279_v40, %v580_v18  ;;  %405 = vmatpush.msrb.mxu2 %v169_v54  ;;  %v264_v18 = vmul.f32 0.5, %v577_v14  ;;  %v168_v14 = vld [vmem:[%s686_s7 + $0x28] sm:$0xff] }
  0xca   :  { %v303_v46 = vor.u32 1.1754944e-38, %v302_v37  ;;  %vm301_vm3 = vcmp.eq.f32.partialorder %v300_v42, 8.507059e+37 }
  0xcb   :  { %v329_v24 = vmul.f32 %v328_v20, %v597_v43  ;;  %v318_v47 = vmul.f32 %v317_v38, %v597_v43  ;;  %406 = vmatpush.msrb.mxu2 %v168_v14 }
  0xcd   :  { %v330_v26 = vadd.f32 1.0, %v329_v24  ;;  %v319_v43 = vadd.f32 1.1283791, %v318_v47 }
  0xce   :  { %v454_v29 = vpop.eup %453 }
  0xcf   :  { %v292_v34 = vmul.f32 %v454_v29, %v290_v12  ;;  %455 = vrcp.f32 %v330_v26  ;;  %vm297_vm0 = vweird.f32 %v454_v29  ;;  %v342_v56 = vand.u32 2147483648, %v330_v26 }
  0xd0   :  { %vm298_vm2 = vmor %vm296_vm1, %vm297_vm0  ;;  %v340_v58 = vand.u32 2147483647, %v330_v26  ;;  %vm336_vm5 = vweird.f32 %v330_v26  ;;  %v320_v63 = vmul.f32 %v319_v43, %v591_v33  ;;  %v167_v33 = vld [vmem:[%s686_s7 + $0x20] sm:$0xff] }
  0xd1   :  { %v293_v36 = vsub.f32 1.0, %v292_v34  ;;  %v343_v61 = vor.u32 1.1754944e-38, %v342_v56  ;;  %407 = vmatpush.msrb.mxu2 %v167_v33 }
  0xd2   :  { %vm341_vm7 = vcmp.eq.f32.partialorder %v340_v58, 8.507059e+37 }
  0xd3   :  { %v294_v41 = vmul.f32 %v454_v29, %v293_v36  ;;  %408 = vmatpush.msrb.mxu2 %v166_v8 }
  0xd5   :  { %v456_v44 = vpop.eup %455  ;;  %v295_v45 = vadd.f32 %v454_v29, %v294_v41  ;;  %409 = vmatpush.msrb.mxu2 %v165_v28 }
  0xd6   :  { %v332_v48 = vmul.f32 %v456_v44, %v330_v26  ;;  %vm337_vm4 = vweird.f32 %v456_v44 }
  0xd7   :  { %v299_v51 = vsel %vm298_vm2, %v454_v29, %v295_v45  ;;  %vm338_vm6 = vmor %vm336_vm5, %vm337_vm4  ;;  %410 = vmatpush.msrb.mxu2 %v164_v9  ;;  %v451_v29 = vld [vmem:[%s684_s5] ss:$0 sm:$0xff] }
  0xd8   :  { %v304_v52 = vsel %vm301_vm3, %v303_v46, %v299_v51  ;;  %v333_v53 = vsub.f32 1.0, %v332_v48 }
  0xd9   :  { %v305_v55 = vmul.f32 %v304_v52, %v280_v50  ;;  %411 = vmatpush.msrb.mxu2 %v163_v10 }
  0xda   :  { %v334_v57 = vmul.f32 %v456_v44, %v333_v53 }
  0xdb   :  { %v442_v59 = vclamps-f32 %v305_v55, 1.0 }
  0xdc   :  { %v335_v60 = vadd.f32 %v456_v44, %v334_v57 }
  0xdd   :  { %v348_v62 = vadd.f32 1.0, %v442_v59 }
  0xde   :  { %v339_v0 = vsel %vm338_vm6, %v456_v44, %v335_v60 }
  0xdf   :  { %v344_v1 = vsel %vm341_vm7, %v343_v61, %v339_v0  ;;  %v350_v2 = vmul.f32 %v348_v62, %v264_v18 }
  0xe0   :  { %v345_v3 = vmul.f32 %v344_v1, %v320_v63 }
  0xe1   :  { %371 = vmatmul.f32.vlgmr.msrb.gmra.mxu0 %v350_v2 }
  0xe2   :  { %v443_v4 = vclamps-f32 %v345_v3, 1.0 }
  0xe4   :  { %v349_v6 = vadd.f32 1.0, %v443_v4 }
  0xe6   :  { %v351_v7 = vmul.f32 %v349_v6, %v265_v5 }
  0xe8   :  { %391 = vmatmul.f32.vlgmr.msrb.gmra.mxu1 %v351_v7 }
 0x15e   :  { %v372_v12 = vpop.f32.mrf.mxu0 }
 0x15f   :  { %v373_v13 = vadd.f32 %v450_v11, %v372_v12 }
 0x165   :  { %v392_v15 = vpop.f32.mrf.mxu1 }
 0x166   :  { %v393_v16 = vadd.f32 %v392_v15, %v373_v13 }
 0x168   :  { %v395_v17 = vmul.f32 %v393_v16, %v393_v16 }
 0x16a   :  { %412 = vmatmul.f32.vlgmr.msrb.gmra.mxu2 %v395_v17 }
 0x1ed   :  { %v413_v19 = vpop.f32.mrf.mxu2 }
 0x1ee   :  { %v414_v20 = vadd.f32 1e-05, %v413_v19 }
 0x1f0   :  { %457 = vrsqrt.f32 %v414_v20  ;;  %vm422_vm9 = vweird.f32 %v414_v20 }
 0x1f6   :  { %v458_v21 = vpop.eup %457 }
 0x1f7   :  { %v417_v22 = vmul.f32 %v458_v21, %v414_v20  ;;  %vm423_vm8 = vweird.f32 %v458_v21 }
 0x1f8   :  { %vm424_vm10 = vmor %vm422_vm9, %vm423_vm8 }
 0x1f9   :  { %v418_v23 = vmul.f32 %v458_v21, %v417_v22 }
 0x1fb   :  { %v419_v24 = vmul.f32 0.5, %v418_v23 }
 0x1fd   :  { %v420_v25 = vsub.f32 1.5, %v419_v24 }
 0x1ff   :  { %v421_v26 = vmul.f32 %v458_v21, %v420_v25 }
 0x201   :  { %v425_v30 = vsel %vm424_vm10, %v458_v21, %v421_v26 }
 0x202   :  { %v426_v31 = vmul.f32 %v425_v30, %v393_v16 }
 0x204   :  { %v430_v34 = vmul.f32 %v451_v29, %v426_v31 }
 0x206   :  { %v434_v35 = vadd.f32 %v452_v32, %v430_v34 }
 0x208   :  { %435 = vst [vmem:[%s687_s8] sm:$0xff] %v434_v35 }
 0x209   :  { %440 = vsyncpa [#allocation3], 1 }
 0x20a   :  { %441 = vsyncpa [#allocation5], 1 }

</bundles_post_ra>
